<compile_context>
chip_gen: v6e
topology: v6e:2x2x1
jax: 0.10.0
libtpu: 0.0.40
codegen_flags: <defaults>
</compile_context>

<pallas_src>
import functools

import jax
import jax.numpy as jnp
from jax.experimental import pallas as pl
from jax.experimental.pallas import tpu as pltpu


def _pixel_shuffle_kernel(x_ref, o_ref, *, rH, rW, oC, tH, W):
    """x_ref: (C, tH, W) tile  ->  o_ref: (oC, tH, rH*oW) tile (row-grouped lanes)."""
    oW = W * rW
    for rh in range(rH):
        if rW == 1:
            # No W-interleave needed: the channel slice is already the row.
            row = x_ref[rh * oC:(rh + 1) * oC, :, :]          # (oC, tH, oW)
        else:
            cols = []
            for rw in range(rW):
                c0 = (rh * rW + rw) * oC
                s = x_ref[c0:c0 + oC, :, :]                   # (oC, tH, W)
                cols.append(jnp.swapaxes(s, -1, -2))          # (oC, W, tH)  XLU
            # W-interleave above the lane dim: (oC, W, rW, tH) -> (oC, oW, tH)
            t = jnp.stack(cols, axis=2).reshape(oC, oW, tH)
            row = jnp.swapaxes(t, -1, -2)                     # (oC, tH, oW) XLU
        # In the (N, oC, H, rH*oW) output view the rh-interleave is a
        # contiguous lane group: store directly, no stack/reshape pass.
        o_ref[:, :, rh * oW:(rh + 1) * oW] = row


def _pad_up(v, m):
    return -(-v // m) * m


def _working_set_bytes(C, oC, W, rH, rW, tH, itemsize):
    """Conservative padded-VMEM estimate of one grid step's working set."""
    sub_t = max(8, 32 // itemsize)                 # packed sublane tile
    oW = W * rW
    in_tile = C * _pad_up(tH, sub_t) * _pad_up(W, 128) * itemsize
    out_tile = oC * _pad_up(tH, sub_t) * _pad_up(rH * oW, 128) * itemsize
    # Transposed intermediates hold tH on the lane axis.
    trans = rW * oC * _pad_up(W, sub_t) * _pad_up(tH, 128) * itemsize
    # Double-buffered in/out blocks + slice/stack/transpose temporaries.
    return 2 * (in_tile + out_tile) + in_tile + 2 * out_tile + 2 * trans


def _vmem_params():
    """(tile budget bytes, vmem_limit_bytes) derived from the chip's VMEM."""
    mib = 1024 * 1024
    try:
        cap = int(getattr(pltpu.get_tpu_info(), "vmem_capacity_bytes", 0) or 0)
    except Exception:  # pragma: no cover - info query unavailable
        cap = 0
    if cap <= 0:
        cap = 64 * mib                              # assume smallest (v7x per-TC)
    if cap >= 100 * mib:                            # v5e / v6e: 128 MiB physical
        return 48 * mib, 96 * mib
    # v7x-class (64 MiB per TensorCore): stay conservative, leave Mosaic headroom.
    return 16 * mib, min(48 * mib, max(cap - 16 * mib, 24 * mib))


def _choose_tile_h(N, C, oC, H, W, rH, rW, itemsize, budget_bytes):
    """Largest tile_h that fits the VMEM budget, keeps >=4 (>=2) grid steps when
    possible, and prefers dtype-aligned sublane multiples."""
    sub_align = max(8, 32 // itemsize)              # 8 f32 / 16 bf16 / 32 int8
    cands = [d for d in range(8, H + 1, 8) if H % d == 0]
    if H not in cands:
        cands.append(H)                             # full-H block is always legal
    fitting = [d for d in cands
               if _working_set_bytes(C, oC, W, rH, rW, d, itemsize) <= budget_bytes]
    if not fitting:
        fitting = [min(cands)]                      # best effort; limit has headroom

    def pick(pool):
        aligned = [d for d in pool if d % sub_align == 0 or d == H]
        return max(aligned) if aligned else max(pool)

    for min_steps in (4, 2, 1):                     # keep pipeline/megacore fed
        pool = [d for d in fitting if N * (H // d) >= min_steps]
        if pool:
            return pick(pool)
    return pick(fitting)


def pixel_shuffler(x, size=(2, 2), tile_h=None):
    """PixelShuffler forward: x is NCHW, returns (N, C//(rH*rW), H*rH, W*rW)."""
    N, C, H, W = x.shape
    rH, rW = int(size[0]), int(size[1])
    oC = C // (rH * rW)
    if C != oC * rH * rW:
        raise ValueError("C must be divisible by rH*rW")
    oH, oW = H * rH, W * rW
    itemsize = jnp.dtype(x.dtype).itemsize

    budget, vmem_limit = _vmem_params()
    if tile_h is None:
        tile_h = _choose_tile_h(N, C, oC, H, W, rH, rW, itemsize, budget)
    if H % tile_h != 0 or not (tile_h % 8 == 0 or tile_h == H):
        raise ValueError("tile_h must divide H and be a multiple of 8 (or == H)")

    kernel = functools.partial(
        _pixel_shuffle_kernel, rH=rH, rW=rW, oC=oC, tH=tile_h, W=W)

    out_flat = pl.pallas_call(
        kernel,
        # Output is produced in the (N, oC, H, rH*oW) view of the NCHW result:
        # the same bytes/contiguity in HBM, but a lane-denser kernel block.
        out_shape=jax.ShapeDtypeStruct((N, oC, H, rH * oW), x.dtype),
        grid_spec=pltpu.PrefetchScalarGridSpec(
            num_scalar_prefetch=0,
            grid=(N, H // tile_h),
            in_specs=[pl.BlockSpec((None, C, tile_h, W),
                                   lambda n, h: (n, 0, h, 0))],
            out_specs=pl.BlockSpec((None, oC, tile_h, rH * oW),
                                   lambda n, h: (n, 0, h, 0)),
        ),
        compiler_params=pltpu.CompilerParams(
            dimension_semantics=("parallel", "parallel"),
            vmem_limit_bytes=vmem_limit,
        ),
        cost_estimate=pl.CostEstimate(
            flops=0,
            transcendentals=0,
            bytes_accessed=2 * N * C * H * W * itemsize),
    )(x)

    # Free contiguous reshape back to the module's NCHW output shape.
    return out_flat.reshape(N, oC, oH, oW)


def _reference(x, size=(2, 2)):
    # Pure-JAX replica of the PyTorch forward, used only as a correctness check.
    N, C, H, W = x.shape
    rH, rW = size
    oC = C // (rH * rW)
    out = x.reshape(N, rH, rW, oC, H, W)
    out = jnp.transpose(out, (0, 3, 4, 1, 5, 2))
    return out.reshape(N, oC, H * rH, W * rW)


if __name__ == "__main__":
    key = jax.random.PRNGKey(0)
    x = jax.random.normal(key, (2, 4, 16, 16), dtype=jnp.float32)
    ref = _reference(x, size=(2, 2))

    # Default tile selection (grid-depth preference picks tH=8 -> grid (2, 2)).
    y = jax.block_until_ready(pixel_shuffler(x, size=(2, 2)))
    assert y.shape == (2, 1, 32, 32), y.shape
    assert y.dtype == x.dtype
    assert jnp.array_equal(y, ref), "Pallas output mismatch vs reference"

    # Explicitly pinned tile_h exercises the same tiled path deterministically.
    y2 = jax.block_until_ready(pixel_shuffler(x, size=(2, 2), tile_h=8))
    assert jnp.array_equal(y2, ref), "Pallas (tiled) output mismatch vs reference"

    # Non-square upscale / rH != rW sanity check.
    x3 = jax.random.normal(jax.random.PRNGKey(1), (1, 6, 8, 16), jnp.float32)
    y3 = jax.block_until_ready(pixel_shuffler(x3, size=(3, 2)))
    assert y3.shape == (1, 1, 24, 32), y3.shape
    assert jnp.array_equal(y3, _reference(x3, size=(3, 2)))

    # bf16 path (exercises dtype-aware alignment and a 128-lane output block).
    x4 = jax.random.normal(jax.random.PRNGKey(2), (2, 8, 16, 32),
                           jnp.float32).astype(jnp.bfloat16)
    y4 = jax.block_until_ready(pixel_shuffler(x4, size=(2, 2)))
    assert y4.shape == (2, 2, 32, 64), y4.shape
    assert jnp.array_equal(y4, _reference(x4, size=(2, 2)))

    print("KERNEL_OK")
</pallas_src>

<mosaic_0001>
module attributes {stable_mosaic.version = 11 : i64} {
  func.func @_pixel_shuffle_kernel(%arg0: i32, %arg1: i32, %arg2: memref<1x4x8x16xf32, #tpu.memory_space<vmem>>, %arg3: memref<1x1x8x64xf32, #tpu.memory_space<vmem>>) attributes {dimension_semantics = [#tpu.dimension_semantics<parallel>, #tpu.dimension_semantics<parallel>], iteration_bounds = array<i64: 2, 2>, scalar_prefetch = 0 : i64, scratch_operands = 0 : i64, tpu.core_type = #tpu.core_type<tc>, window_params = [{transform_indices = @transform_0, window_bounds = array<i64: 1, 4, 8, 16>}, {transform_indices = @transform_1, window_bounds = array<i64: 1, 1, 8, 64>}]} {
    %c0 = arith.constant 0 : index
    %c0_0 = arith.constant 0 : index
    %c0_1 = arith.constant 0 : index
    %c0_2 = arith.constant 0 : index
    %0 = vector.load %arg2[%c0, %c0_0, %c0_1, %c0_2] : memref<1x4x8x16xf32, #tpu.memory_space<vmem>>, vector<1x1x8x16xf32>
    %1 = vector.shape_cast %0 : vector<1x1x8x16xf32> to vector<1x8x16xf32>
    %2 = tpu.transpose %1, [0, 2, 1] : vector<1x8x16xf32> -> vector<1x16x8xf32>
    %c0_3 = arith.constant 0 : index
    %c1 = arith.constant 1 : index
    %c0_4 = arith.constant 0 : index
    %c0_5 = arith.constant 0 : index
    %3 = vector.load %arg2[%c0_3, %c1, %c0_4, %c0_5] : memref<1x4x8x16xf32, #tpu.memory_space<vmem>>, vector<1x1x8x16xf32>
    %4 = vector.shape_cast %3 : vector<1x1x8x16xf32> to vector<1x8x16xf32>
    %5 = tpu.transpose %4, [0, 2, 1] : vector<1x8x16xf32> -> vector<1x16x8xf32>
    %6 = vector.shape_cast %2 : vector<1x16x8xf32> to vector<1x16x1x8xf32>
    %7 = vector.shape_cast %5 : vector<1x16x8xf32> to vector<1x16x1x8xf32>
    %8 = tpu.concatenate %6, %7 in 2 : vector<1x16x1x8xf32>, vector<1x16x1x8xf32> -> vector<1x16x2x8xf32>
    %9 = vector.shape_cast %8 : vector<1x16x2x8xf32> to vector<1x32x8xf32>
    %10 = tpu.transpose %9, [0, 2, 1] : vector<1x32x8xf32> -> vector<1x8x32xf32>
    %c0_6 = arith.constant 0 : index
    %c0_7 = arith.constant 0 : index
    %c0_8 = arith.constant 0 : index
    %c0_9 = arith.constant 0 : index
    %11 = vector.load %arg3[%c0_6, %c0_7, %c0_8, %c0_9] : memref<1x1x8x64xf32, #tpu.memory_space<vmem>>, vector<1x1x8x32xf32>
    %12 = vector.shape_cast %11 : vector<1x1x8x32xf32> to vector<1x8x32xf32>
    %13 = vector.shape_cast %10 : vector<1x8x32xf32> to vector<1x1x8x32xf32>
    tpu.vector_store %arg3[%c0_6, %c0_7, %c0_8, %c0_9], %13 {strides = array<i32>} : memref<1x1x8x64xf32, #tpu.memory_space<vmem>>, vector<1x1x8x32xf32>,
    %c0_10 = arith.constant 0 : index
    %c2 = arith.constant 2 : index
    %c0_11 = arith.constant 0 : index
    %c0_12 = arith.constant 0 : index
    %14 = vector.load %arg2[%c0_10, %c2, %c0_11, %c0_12] : memref<1x4x8x16xf32, #tpu.memory_space<vmem>>, vector<1x1x8x16xf32>
    %15 = vector.shape_cast %14 : vector<1x1x8x16xf32> to vector<1x8x16xf32>
    %16 = tpu.transpose %15, [0, 2, 1] : vector<1x8x16xf32> -> vector<1x16x8xf32>
    %c0_13 = arith.constant 0 : index
    %c3 = arith.constant 3 : index
    %c0_14 = arith.constant 0 : index
    %c0_15 = arith.constant 0 : index
    %17 = vector.load %arg2[%c0_13, %c3, %c0_14, %c0_15] : memref<1x4x8x16xf32, #tpu.memory_space<vmem>>, vector<1x1x8x16xf32>
    %18 = vector.shape_cast %17 : vector<1x1x8x16xf32> to vector<1x8x16xf32>
    %19 = tpu.transpose %18, [0, 2, 1] : vector<1x8x16xf32> -> vector<1x16x8xf32>
    %20 = vector.shape_cast %16 : vector<1x16x8xf32> to vector<1x16x1x8xf32>
    %21 = vector.shape_cast %19 : vector<1x16x8xf32> to vector<1x16x1x8xf32>
    %22 = tpu.concatenate %20, %21 in 2 : vector<1x16x1x8xf32>, vector<1x16x1x8xf32> -> vector<1x16x2x8xf32>
    %23 = vector.shape_cast %22 : vector<1x16x2x8xf32> to vector<1x32x8xf32>
    %24 = tpu.transpose %23, [0, 2, 1] : vector<1x32x8xf32> -> vector<1x8x32xf32>
    %c0_16 = arith.constant 0 : index
    %c0_17 = arith.constant 0 : index
    %c0_18 = arith.constant 0 : index
    %c32 = arith.constant 32 : index
    %25 = vector.load %arg3[%c0_16, %c0_17, %c0_18, %c32] : memref<1x1x8x64xf32, #tpu.memory_space<vmem>>, vector<1x1x8x32xf32>
    %26 = vector.shape_cast %25 : vector<1x1x8x32xf32> to vector<1x8x32xf32>
    %27 = vector.shape_cast %24 : vector<1x8x32xf32> to vector<1x1x8x32xf32>
    tpu.vector_store %arg3[%c0_16, %c0_17, %c0_18, %c32], %27 {strides = array<i32>} : memref<1x1x8x64xf32, #tpu.memory_space<vmem>>, vector<1x1x8x32xf32>,
    return
  }
  func.func @transform_0(%arg0: i32, %arg1: i32) -> (i32, i32, i32, i32) {
    %c0_i32 = arith.constant 0 : i32
    %c0_i32_0 = arith.constant 0 : i32
    %c0_i32_1 = arith.constant 0 : i32
    return %arg0, %c0_i32, %arg1, %c0_i32_0 : i32, i32, i32, i32
  }
  func.func @transform_1(%arg0: i32, %arg1: i32) -> (i32, i32, i32, i32) {
    %c0_i32 = arith.constant 0 : i32
    %c0_i32_0 = arith.constant 0 : i32
    %c0_i32_1 = arith.constant 0 : i32
    return %arg0, %c0_i32, %arg1, %c0_i32_0 : i32, i32, i32, i32
  }
}

</mosaic_0001>

<bundles_post_ra>
// kernel: tpu_custom_call.1
= control target key start
LH: loop header
LB: loop body
LE: loop exit
PB: predicated region body
PF: predicated region fallthrough
CT: control target
= control target key end

     0   :  { %6 = vsyncpa [#allocation3], 0  ;;  %s1856_s0 = inlined_call_operand.hbm [shape: f32[2,4,16,16], index: 0, kind: input, shape index: {}]   ;;  %s1857_s1 = inlined_call_operand.hbm [shape: f32[2,1,16,64], index: 1, kind: output, shape index: {}]  }
   0x1   :  { %8 = vsyncpa [#allocation3 + $0x1], 0 }
   0x2   :  { %9 = vsyncpa [#allocation4], 0 }
   0x3   :  { %11 = vsyncpa [#allocation4 + $0x1], 0  ;;  %s1508_s6 = smov 0   ;;  %s1510_s7 = smov 0  }
   0x4   :  { %s1512_s8 = smov 0   ;;  %s1514_s9 = smov 0  }
   0x5   :  { %s1516_s10 = smov 0   ;;  %s1518_s11 = smov 0  }
   0x6   :  { %s1520_s12 = smov 0   ;;  %s1522_s13 = smov 0  }
   0x7 LB: > { %s1261_s14 = sadd.s32 4294967295, %s1488_s13   ;;  %s1262_s15 = sadd.s32 4294967294, %s1488_s13   ;;  %s1488_s13 = sphi %s1522_s13, %s17_s13   ;;  %s1484_s12 = sphi %s1520_s12, %s1869_s12   ;;  %s1480_s11 = sphi %s1518_s11, %s1868_s11   ;;  %s1476_s10 = sphi %s1516_s10, %s1867_s10   ;;  %s1472_s9 = sphi %s1514_s9, %s1866_s9   ;;  %s1468_s8 = sphi %s1512_s8, %s1865_s8   ;;  %s1464_s7 = sphi %s1510_s7, %s1864_s7   ;;  %s1460_s6 = sphi %s1508_s6, %s1863_s6  }
   0x8   : > { %s26_s16 = sadd.s32 1, %s1480_s11  ;;  %s29_s17 = sadd.s32 1, %s1484_s12 }
   0x9   : > { %p27_p0 = scmp.ge.s32.totalorder %s26_s16, 2  ;;  %s38_s18 = sadd.s32 1, %s1468_s8 }
   0xa   : > { %p45_p1 = scmp.ne.s32.totalorder %s1468_s8, %s1464_s7  ;;  %p46_p2 = scmp.eq.s32.totalorder %s1488_s13, 0 }
   0xb   : > { %s1871_s16 = smov (%p27_p0, %s26_s16), 0  ;;  %s1873_s17 = smov (!%p27_p0, %s29_s17), %s1484_s12 }
   0xc   : > { %s34_s19 = ssub.s32 %s1480_s11, %s1871_s16  ;;  %p1561_p3 = por %p46_p2, %p45_p1 }
   0xd   : > { %p31_p4 = scmp.ge.s32.totalorder %s1873_s17, 2  ;;  %p51_p5 = scmp.ne.s32.totalorder %s1464_s7, %s1460_s6 }
   0xe   : > { %p52_p6 = scmp.eq.s32.totalorder %s1261_s14, 0  ;;  %p77_p7 = scmp.eq.s32.totalorder %s1261_s14, 3 }
   0xf   : > { %s1875_s17 = smov (%p31_p4, %s1873_s17), 0  ;;  %p83_p10 = scmp.eq.s32.totalorder %s1262_s15, 3 }
  0x10   : > { %p1569_p8 = por %p52_p6, %p51_p5  ;;  %p1573_p9 = por %p77_p7, %p45_p1 }
  0x11   : > { %s33_s23 = ssub.s32 %s1484_s12, %s1875_s17  ;;  %p1579_p12 = por %p83_p10, %p51_p5 }
  0x12   : > { %s35_s24 = sor.u32 %s34_s19, %s33_s23  ;;  %p1291_p13 = scmp.lt.s32.totalorder %s1488_s13, 4 }
  0x13   : > { %p36_p11 = scmp.eq.s32.totalorder %s35_s24, 0  ;;  %s103_s26 = sand.u32 1, %s1468_s8  }
  0x14   : > { %s1265_s28 = sshll.u32 %s103_s26, 5  ;;  %s1266_s29 = sshll.u32 %s1484_s12, 3 }
  0x15   : > { %s1586_s27 = scalar_select %p36_p11, %s1468_s8, %s38_s18  }
  0x16   : > { %s112_s30 = sadd.s32 %s1480_s11, %s1266_s29  ;;  %s107_s2 = scalar_lea.vmem [#allocation2], %s1265_s28 }
  0x17   : > { %s115_s3 = sshll.u32 %s107_s2, 4  ;;  %s1267_s4 = sshll.u32 %s112_s30, 7  ;;  %s116_s3 = int_to_ptr.vmem [resolvable:$true] %s115_s3 }
  0x18   : > { %s114_s15 = scalar_lea.hbm %s1856_s0, %s1267_s4  ;;  %p1595_p0 = pnand %p1291_p13, %p1561_p3 }
  0x19   : > { %s104_s23 = scalar_lea.sflag [#allocation3], %s103_s26  ;;  %s1377_s18 = scalar_lea.vmem %s116_s3, 512 }
  0x1a   : > { %p1366_p1 = pneg %p1595_p0  ;;  %p1378_p2 = scmp.ne.s32.totalorder %s116_s3, %s1377_s18 }
  0x1b   : > { %s1490_s24 = smov [#allocation2]  }
  0x1c   : > { %p1380_p4 = pnand %p1378_p2, %p1366_p1  ;;  %s1382_s28 = sshll.u32 %s1490_s24, 4  ;;  %s1383_s28 = int_to_ptr.vmem [resolvable:$false] %s1382_s28 }
  0x1d   : > { %s1384_s29 = scalar_lea.vmem %s1383_s28, 1024  ;;  %p1385_p6 = scmp.lt.s32.totalorder %s116_s3, %s1383_s28 }
  0x1e   : > { %p1381_p5 = pneg %p1380_p4  ;;  %p1386_p7 = scmp.lt.s32.totalorder %s1384_s29, %s1377_s18 }
  0x20   : > { %p1387_p10 = por %p1386_p7, %p1385_p6 }
  0x22   : > { %p1388_p11 = pnand %p1387_p10, %p1381_p5 }
  0x24   : > { %1391 = shalt.err (!%p1388_p11)
}
  0x25   : > { %s1491_s20 = smov 256   ;;  %s1492_s26 = smov 128  }
  0x26   : > { %s1493_s30 = smov 8   ;;  %p1268_p3 = scmp.ge.s32.totalorder %s1488_s13, 1 }
  0x27   : > { %1286 = dma.hbm_to_vmem [thread:$0]  (!%p1595_p0), %s114_s15, 512, %s116_s3, %s104_s23, %s1491_s20, %s1492_s26, %s1493_s30  }
  0x28   : > { %p123_p13 = scmp.lt.s32.totalorder %s1488_s13, 5 }
  0x2a   : > { %p124_p1 = pnand %p1268_p3, %p123_p13 }
  0x2b   : > { %s1606_s2 = sand.u32 (!%p124_p1), 1, %s1464_s7  }
  0x2c   : > { %127 = sbr.rel (%p124_p1) target bundleno = 455 (0x1c7), region = 24  ;;  %s1269_s4 = sshll.u32 (!%p124_p1), %s1606_s2, 5 }
  0x2d   : > { %s130_s5 = scalar_lea.sflag (!%p124_p1), [#allocation3], %s1606_s2  ;;  %s133_s14 = scalar_lea.vmem (!%p124_p1), [#allocation2], %s1269_s4 }
  0x31   : > { %1451 = dma.done.wait (%p1569_p8), %s130_s5, 512  }
  0x32   : > { %1453 = vsyncadd (%p1569_p8), %s130_s5, 4294966784  ;;  %v1273_v0 = vld [vmem:[%s133_s14 + $0x18] sm:$0xff]  ;;  %v1272_v1 = vld [vmem:[%s133_s14 + $0x10] sm:$0xff]  ;;  %v1494_v4 = vmov 1966171168   ;;  %v225_v6 = vlaneseq  ;;  %vm515_vm0 = vcmask 1040384  }
  0x33   : > { %690 = vxpose.xlu0.b32.start.end [1/1] (short) (narrow) %v1273_v0, 16  ;;  %v1271_v2 = vld [vmem:[%s133_s14 + $0x8] sm:$0xff]  ;;  %v152_v3 = vld [vmem:[%s133_s14] sm:$0xff]  ;;  %v223_v5 = vunpack.c.l.s4 %v1494_v4  ;;  %v1495_v10 = vmov 1983009808   ;;  %s1496_s21 = smov 32  }
  0x34   : > { %v226_v8 = vshrl.u32 %v225_v6, 7  ;;  %v551_v11 = vunpack.c.l.s4 %v1495_v10  ;;  %s1270_s3 = sshll.u32 %s1606_s2, 3  ;;  %vm652_vm1 = vcmask 261120   ;;  %s1275_s19 = sshll.u32 %s1476_s10, 1  ;;  %vm1158_vm2 = vcmask 523520  }
  0x35   : > { %v224_v7 = vunpack.c.0.s8 %v223_v5  ;;  %s151_s15 = scalar_lea.vmem [#allocation5], %s1270_s3  ;;  %s1172_s23 = sadd.s32 %s1472_s9, %s1275_s19 }
  0x36   : > { %v1617_v15 = vsub.s32 0, %v226_v8  ;;  %v552_v16 = vunpack.c.0.s8 %v551_v11  ;;  %s1276_s18 = sshll.u32 %s1172_s23, 7  ;;  %s1176_s24 = sshll.u32 %s151_s15, 4  ;;  %s1177_s24 = int_to_ptr.vmem [resolvable:$true] %s1176_s24 }
  0x37   : > { %v1614_v9 = vsub.s32 %v224_v7, %v226_v8  ;;  %s1809_s20 = scalar_lea.hbm %s1857_s1, %s1276_s18  ;;  %s1161_s26 = scalar_lea.sflag [#allocation4], %s1606_s2 }
  0x38   : > { %656 = vxpose.xlu0.b32.start.end [1/1] (short) (narrow) %v1272_v1, 16  ;;  %v1627_v28 = vsub.s32 %v552_v16, %v226_v8  ;;  %s1392_s30 = scalar_lea.vmem %s1177_s24, 128  ;;  %s1497_s4 = smov [#allocation5]  }
  0x39   : > { %p1393_p8 = scmp.ne.s32.totalorder %s1177_s24, %s1392_s30  ;;  %s1396_s10 = sshll.u32 %s1497_s4, 4  ;;  %s1397_s10 = int_to_ptr.vmem [resolvable:$false] %s1396_s10 }
  0x3a   : > { %s1398_s9 = scalar_lea.vmem %s1397_s10, 256  ;;  %p1399_p4 = scmp.lt.s32.totalorder %s1177_s24, %s1397_s10 }
  0x3b   : > { %p1394_p0 = pnand %p1393_p8, %p1573_p9  ;;  %p1400_p5 = scmp.lt.s32.totalorder %s1398_s9, %s1392_s30 }
  0x3d   : > { %187 = vxpose.xlu0.b32.start.end [1/1] (short) (narrow) %v1271_v2, 16  ;;  %p1395_p2 = pneg %p1394_p0  ;;  %p1401_p6 = por %p1400_p5, %p1399_p4 }
  0x3f   : > { %p1402_p7 = pnand %p1401_p6, %p1395_p2 }
  0x42   : > { %153 = vxpose.xlu0.b32.start.end [1/1] (short) (narrow) %v152_v3, 16 }
  0xaf   : > { %v706_v12 = vpop.trf.xlu0 }
  0xb0   : > { %v840_v13 = vcombine.high %v706_v12, %v706_v12  ;;  %v847_v14 = vrot.slane %v706_v12, %v1614_v9 }
  0xb2   : > { %v854_v17 = vrot.slane %v840_v13, %v1614_v9  ;;  %v855_v18 = vcombine.high %v847_v14, %v847_v14  ;;  %v863_v19 = vrot.slane %v847_v14, %v1614_v9 }
  0xb3   : > { %v707_v20 = vpop.trf.xlu0 }
  0xb4   : > { %v856_v21 = vcombine.high %v854_v17, %v854_v17  ;;  %v1622_v22 = vrot.slane %v854_v17, %v1614_v9  ;;  %v877_v23 = vrot.slane %v855_v18, %v1614_v9  ;;  %v885_v24 = vcombine.high %v863_v19, %v863_v19 }
  0xb5   : > { %v941_v25 = vrot.slane %v863_v19, %v1617_v15  ;;  %v889_v26 = vcombine.high %v707_v20, %v707_v20  ;;  %v896_v27 = vrot.slane %v707_v20, %v1614_v9 }
  0xb6   : > { %v1630_v29 = vrot.slane %v856_v21, %v1614_v9  ;;  %v886_v30 = vcombine.high %v1622_v22, %v1622_v22  ;;  %v887_v31 = vcombine.high %v877_v23, %v877_v23  ;;  %v945_v32 = vrot.slane %v877_v23, %v1617_v15 }
  0xb7   : > { %v949_v33 = vrot.slane %v885_v24, %v1617_v15  ;;  %v957_v34 = vrot.slane %v1622_v22, %v1617_v15  ;;  %v903_v35 = vrot.slane %v889_v26, %v1614_v9  ;;  %v904_v36 = vcombine.high %v896_v27, %v896_v27  ;;  %v672_v37 = vpop.trf.xlu0 }
  0xb8   : > { %v888_v38 = vcombine.high %v1630_v29, %v1630_v29  ;;  %v961_v39 = vrot.slane %v1630_v29, %v1617_v15  ;;  %v965_v40 = vrot.slane %v886_v30, %v1617_v15  ;;  %v1645_v41 = vrot.slane %v896_v27, %v1614_v9 }
  0xb9   : > { %v905_v42 = vcombine.high %v903_v35, %v903_v35  ;;  %v1648_v43 = vrot.slane %v903_v35, %v1614_v9  ;;  %v926_v44 = vrot.slane %v904_v36, %v1614_v9  ;;  %v724_v45 = vcombine.high %v672_v37, %v672_v37 }
  0xba   : > { %v934_v46 = vcombine.high %v1645_v41, %v1645_v41  ;;  %v973_v47 = vrot.slane %v1645_v41, %v1617_v15  ;;  %v731_v48 = vrot.slane %v672_v37, %v1614_v9  ;;  %v953_v49 = vrot.slane %v887_v31, %v1617_v15 }
  0xbb   : > { %v1658_v50 = vrot.slane %v905_v42, %v1614_v9  ;;  %v935_v51 = vcombine.high %v1648_v43, %v1648_v43  ;;  %v936_v52 = vcombine.high %v926_v44, %v926_v44  ;;  %v977_v53 = vrot.slane %v926_v44, %v1617_v15  ;;  %v673_v58 = vpop.trf.xlu0 }
  0xbc   : > { %v981_v54 = vrot.slane %v934_v46, %v1617_v15  ;;  %v989_v55 = vrot.slane %v1648_v43, %v1617_v15  ;;  %v738_v56 = vrot.slane %v724_v45, %v1614_v9  ;;  %v739_v57 = vcombine.high %v731_v48, %v731_v48 }
  0xbd   : > { %v937_v59 = vcombine.high %v1658_v50, %v1658_v50  ;;  %v985_v60 = vrot.slane %v936_v52, %v1617_v15  ;;  %v993_v61 = vrot.slane %v1658_v50, %v1617_v15  ;;  %v997_v62 = vrot.slane %v935_v51, %v1617_v15 }
  0xbe   : > { %v740_v63 = vcombine.high %v738_v56, %v738_v56  ;;  %v747_v0 = vrot.slane %v731_v48, %v1614_v9  ;;  %v754_v1 = vrot.slane %v738_v56, %v1614_v9  ;;  %v761_v2 = vrot.slane %v739_v57, %v1614_v9 }
  0xbf   : > { %v773_v3 = vcombine.high %v673_v58, %v673_v58  ;;  %v780_v4 = vrot.slane %v673_v58, %v1614_v9  ;;  %v969_v5 = vrot.slane %v888_v38, %v1617_v15  ;;  %v1001_v6 = vrot.slane %v937_v59, %v1617_v15 }
  0xc0   : > { %v768_v7 = vrot.slane %v740_v63, %v1614_v9  ;;  %v769_v8 = vcombine.high %v747_v0, %v747_v0  ;;  %v770_v10 = vcombine.high %v754_v1, %v754_v1  ;;  %v771_v11 = vcombine.high %v761_v2, %v761_v2 }
  0xc1   : > { %v787_v12 = vrot.slane %v773_v3, %v1614_v9  ;;  %v788_v13 = vcombine.high %v780_v4, %v780_v4  ;;  %v796_v14 = vrot.slane %v780_v4, %v1614_v9  ;;  %v1018_v16 = vsel %vm515_vm0, %v747_v0, %v941_v25  ;;  %v203_v25 = vpop.trf.xlu0 }
  0xc2   : > { %v772_v17 = vcombine.high %v768_v7, %v768_v7  ;;  %v1019_v18 = vsel %vm515_vm0, %v761_v2, %v945_v32  ;;  %v1020_v19 = vsel %vm515_vm0, %v769_v8, %v949_v33  ;;  %v1021_v20 = vsel %vm515_vm0, %v771_v11, %v953_v49 }
  0xc3   : > { %v789_v21 = vcombine.high %v787_v12, %v787_v12  ;;  %v803_v22 = vrot.slane %v787_v12, %v1614_v9  ;;  %v810_v23 = vrot.slane %v788_v13, %v1614_v9  ;;  %v818_v24 = vcombine.high %v796_v14, %v796_v14 }
  0xc4   : > { %v1050_v26 = vcombine.low %v1018_v16, %v1019_v18  ;;  %v1051_v27 = vcombine.low %v1020_v19, %v1021_v20  ;;  %v1022_v29 = vsel %vm515_vm0, %v754_v1, %v957_v34  ;;  %v1023_v30 = vsel %vm515_vm0, %v768_v7, %v961_v39 }
  0xc5   : > { %v817_v31 = vrot.slane %v789_v21, %v1614_v9  ;;  %v819_v32 = vcombine.high %v803_v22, %v803_v22  ;;  %v820_v35 = vcombine.high %v810_v23, %v810_v23  ;;  %v1024_v33 = vsel %vm515_vm0, %v770_v10, %v965_v40  ;;  %v204_v57 = vpop.trf.xlu0 }
  0xc6   : > { %v1058_v36 = vrot.slane %v1050_v26, %v1627_v28  ;;  %v1065_v37 = vrot.slane %v1051_v27, %v1627_v28  ;;  %v1025_v38 = vsel %vm515_vm0, %v772_v17, %v969_v5  ;;  %v1067_v41 = vcombine.low %v1022_v29, %v1023_v30 }
  0xc7   : > { %v821_v42 = vcombine.high %v817_v31, %v817_v31  ;;  %v1068_v43 = vcombine.low %v1024_v33, %v1025_v38  ;;  %v1026_v34 = vsel %vm515_vm0, %v796_v14, %v973_v47  ;;  %v1027_v39 = vsel %vm515_vm0, %v810_v23, %v977_v53 }
  0xc8   : > { %v1066_v44 = vcombine.low %v1058_v36, %v1065_v37  ;;  %v1075_v45 = vrot.slane %v1067_v41, %v1627_v28  ;;  %v1028_v46 = vsel %vm515_vm0, %v818_v24, %v981_v54  ;;  %v1029_v40 = vsel %vm515_vm0, %v820_v35, %v985_v60 }
  0xc9   : > { %v1082_v48 = vrot.slane %v1068_v43, %v1627_v28  ;;  %v1084_v49 = vcombine.low %v1026_v34, %v1027_v39  ;;  %v1085_v50 = vcombine.low %v1028_v46, %v1029_v40  ;;  %v1030_v51 = vsel %vm515_vm0, %v803_v22, %v989_v55  ;;  %v169_v16 = vpop.trf.xlu0 }
  0xca   : > { %1122 = vxpose.xlu1.b32.start [1/4] (short) (narrow) %v1066_v44, 8  ;;  %v1031_v52 = vsel %vm515_vm0, %v817_v31, %v993_v61  ;;  %v1032_v47 = vsel %vm515_vm0, %v819_v32, %v997_v62  ;;  %v1033_v53 = vsel %vm515_vm0, %v821_v42, %v1001_v6  ;;  %v337_v56 = vcombine.high %v203_v25, %v203_v25 }
  0xcb   : > { %v1083_v58 = vcombine.low %v1075_v45, %v1082_v48  ;;  %v1092_v54 = vrot.slane %v1084_v49, %v1627_v28  ;;  %v1099_v59 = vrot.slane %v1085_v50, %v1627_v28  ;;  %v1101_v60 = vcombine.low %v1030_v51, %v1031_v52 }
  0xcc   : > { %v1102_v63 = vcombine.low %v1032_v47, %v1033_v53  ;;  %v344_v0 = vrot.slane %v203_v25, %v1614_v9  ;;  %v351_v55 = vrot.slane %v337_v56, %v1614_v9  ;;  %v386_v1 = vcombine.high %v204_v57, %v204_v57 }
  0xcd   : > { %v1100_v2 = vcombine.low %v1092_v54, %v1099_v59  ;;  %v393_v61 = vrot.slane %v204_v57, %v1614_v9  ;;  %v1109_v6 = vrot.slane %v1101_v60, %v1627_v28  ;;  %v221_v20 = vcombine.high %v169_v16, %v169_v16  ;;  %v170_v41 = vpop.trf.xlu0 }
  0xce   : > { %1123 = vxpose.xlu1.b32.cont [2/4] (short) (narrow) %v1083_v58, 8  ;;  %v1116_v62 = vrot.slane %v1102_v63, %v1627_v28  ;;  %v352_v3 = vcombine.high %v344_v0, %v344_v0  ;;  %v353_v4 = vcombine.high %v351_v55, %v351_v55  ;;  %v1712_v5 = vrot.slane %v344_v0, %v1614_v9 }
  0xcf   : > { %v1716_v7 = vrot.slane %v351_v55, %v1614_v9  ;;  %v400_v8 = vrot.slane %v386_v1, %v1614_v9  ;;  %v401_v10 = vcombine.high %v393_v61, %v393_v61  ;;  %v409_v14 = vrot.slane %v393_v61, %v1614_v9 }
  0xd0   : > { %v1720_v11 = vrot.slane %v352_v3, %v1614_v9  ;;  %v1723_v12 = vrot.slane %v353_v4, %v1614_v9  ;;  %v382_v13 = vcombine.high %v1712_v5, %v1712_v5  ;;  %v1117_v17 = vcombine.low %v1109_v6, %v1116_v62 }
  0xd1   : > { %v383_v18 = vcombine.high %v1716_v7, %v1716_v7  ;;  %v402_v19 = vcombine.high %v400_v8, %v400_v8  ;;  %v438_v23 = vrot.slane %v1712_v5, %v1617_v15  ;;  %v454_v24 = vrot.slane %v1716_v7, %v1617_v15 }
  0xd2   : > { %1124 = vxpose.xlu1.b32.cont [3/4] (short) (narrow) %v1100_v2, 8  ;;  %v384_v21 = vcombine.high %v1720_v11, %v1720_v11  ;;  %v385_v22 = vcombine.high %v1723_v12, %v1723_v12  ;;  %v442_v26 = vrot.slane %v1720_v11, %v1617_v15  ;;  %v446_v27 = vrot.slane %v382_v13, %v1617_v15 }
  0xd3   : > { %v1742_v29 = vrot.slane %v400_v8, %v1614_v9  ;;  %v423_v30 = vrot.slane %v401_v10, %v1614_v9  ;;  %v458_v25 = vrot.slane %v1723_v12, %v1617_v15  ;;  %v462_v31 = vrot.slane %v383_v18, %v1617_v15 }
  0xd4   : > { %v1749_v32 = vrot.slane %v402_v19, %v1614_v9  ;;  %v431_v35 = vcombine.high %v409_v14, %v409_v14  ;;  %v450_v33 = vrot.slane %v384_v21, %v1617_v15  ;;  %v466_v36 = vrot.slane %v385_v22, %v1617_v15 }
  0xd5   : > { %v432_v37 = vcombine.high %v1742_v29, %v1742_v29  ;;  %v433_v38 = vcombine.high %v423_v30, %v423_v30  ;;  %v470_v43 = vrot.slane %v409_v14, %v1617_v15  ;;  %v474_v34 = vrot.slane %v423_v30, %v1617_v15 }
  0xd6   : > { %1125 = vxpose.xlu1.b32.end [4/4] (short) (narrow) %v1117_v17, 8  ;;  %v434_v42 = vcombine.high %v1749_v32, %v1749_v32  ;;  %v478_v39 = vrot.slane %v431_v35, %v1617_v15  ;;  %v486_v44 = vrot.slane %v1742_v29, %v1617_v15  ;;  %v490_v45 = vrot.slane %v1749_v32, %v1617_v15 }
  0xd7   : > { %v228_v46 = vrot.slane %v169_v16, %v1614_v9  ;;  %v235_v40 = vrot.slane %v221_v20, %v1614_v9  ;;  %v482_v48 = vrot.slane %v433_v38, %v1617_v15  ;;  %v494_v49 = vrot.slane %v432_v37, %v1617_v15 }
  0xd8   : > { %v270_v50 = vcombine.high %v170_v41, %v170_v41  ;;  %v277_v51 = vrot.slane %v170_v41, %v1614_v9  ;;  %v498_v57 = vrot.slane %v434_v42, %v1617_v15 }
  0xd9   : > { %v236_v52 = vcombine.high %v228_v46, %v228_v46  ;;  %v237_v47 = vcombine.high %v235_v40, %v235_v40  ;;  %v244_v53 = vrot.slane %v228_v46, %v1614_v9  ;;  %v251_v56 = vrot.slane %v235_v40, %v1614_v9 }
  0xda   : > { %v284_v58 = vrot.slane %v270_v50, %v1614_v9  ;;  %v285_v54 = vcombine.high %v277_v51, %v277_v51  ;;  %v293_v59 = vrot.slane %v277_v51, %v1614_v9 }
  0xdb   : > { %v258_v60 = vrot.slane %v236_v52, %v1614_v9  ;;  %v265_v63 = vrot.slane %v237_v47, %v1614_v9  ;;  %v266_v0 = vcombine.high %v244_v53, %v244_v53  ;;  %v267_v55 = vcombine.high %v251_v56, %v251_v56 }
  0xdc   : > { %v286_v1 = vcombine.high %v284_v58, %v284_v58  ;;  %v300_v2 = vrot.slane %v284_v58, %v1614_v9  ;;  %v307_v61 = vrot.slane %v285_v54, %v1614_v9  ;;  %v315_v62 = vcombine.high %v293_v59, %v293_v59 }
  0xdd   : > { %v268_v3 = vcombine.high %v258_v60, %v258_v60  ;;  %v269_v4 = vcombine.high %v265_v63, %v265_v63  ;;  %v524_v15 = vsel %vm515_vm0, %v293_v59, %v470_v43  ;;  %v516_v5 = vsel %vm515_vm0, %v244_v53, %v438_v23 }
  0xde   : > { %v314_v6 = vrot.slane %v286_v1, %v1614_v9  ;;  %v316_v7 = vcombine.high %v300_v2, %v300_v2  ;;  %v317_v8 = vcombine.high %v307_v61, %v307_v61  ;;  %v517_v10 = vsel %vm515_vm0, %v258_v60, %v442_v26 }
  0xdf   : > { %v518_v11 = vsel %vm515_vm0, %v266_v0, %v446_v27  ;;  %v519_v12 = vsel %vm515_vm0, %v268_v3, %v450_v33  ;;  %v548_v13 = vcombine.low %v516_v5, %v517_v10  ;;  %v520_v14 = vsel %vm515_vm0, %v251_v56, %v454_v24 }
  0xe0   : > { %v318_v16 = vcombine.high %v314_v6, %v314_v6  ;;  %v549_v17 = vcombine.low %v518_v11, %v519_v12  ;;  %v521_v18 = vsel %vm515_vm0, %v265_v63, %v458_v25  ;;  %v522_v19 = vsel %vm515_vm0, %v267_v55, %v462_v31 }
  0xe1   : > { %v556_v20 = vrot.slane %v548_v13, %v1627_v28  ;;  %v523_v9 = vsel %vm515_vm0, %v269_v4, %v466_v36  ;;  %v565_v21 = vcombine.low %v520_v14, %v521_v18  ;;  %v525_v22 = vsel %vm515_vm0, %v307_v61, %v474_v34 }
  0xe2   : > { %v563_v23 = vrot.slane %v549_v17, %v1627_v28  ;;  %v566_v26 = vcombine.low %v522_v19, %v523_v9  ;;  %v526_v27 = vsel %vm515_vm0, %v315_v62, %v478_v39  ;;  %v527_v24 = vsel %vm515_vm0, %v317_v8, %v482_v48 }
  0xe3   : > { %v573_v29 = vrot.slane %v565_v21, %v1627_v28  ;;  %v582_v30 = vcombine.low %v524_v15, %v525_v22  ;;  %v583_v25 = vcombine.low %v526_v27, %v527_v24  ;;  %v528_v31 = vsel %vm515_vm0, %v300_v2, %v486_v44 }
  0xe4   : > { %v564_v32 = vcombine.low %v556_v20, %v563_v23  ;;  %v580_v35 = vrot.slane %v566_v26, %v1627_v28  ;;  %v529_v33 = vsel %vm515_vm0, %v314_v6, %v490_v45  ;;  %v530_v36 = vsel %vm515_vm0, %v316_v7, %v494_v49 }
  0xe5   : > { %v590_v37 = vrot.slane %v582_v30, %v1627_v28  ;;  %v531_v38 = vsel %vm515_vm0, %v318_v16, %v498_v57  ;;  %v597_v42 = vrot.slane %v583_v25, %v1627_v28  ;;  %v599_v43 = vcombine.low %v528_v31, %v529_v33 }
  0xe6   : > { %620 = vxpose.xlu0.b32.start [1/4] (short) (narrow) %v564_v32, 8  ;;  %v581_v41 = vcombine.low %v573_v29, %v580_v35  ;;  %v600_v34 = vcombine.low %v530_v36, %v531_v38 }
  0xe7   : > { %v598_v39 = vcombine.low %v590_v37, %v597_v42  ;;  %v607_v44 = vrot.slane %v599_v43, %v1627_v28 }
  0xe8   : > { %v614_v45 = vrot.slane %v600_v34, %v1627_v28 }
  0xea   : > { %621 = vxpose.xlu0.b32.cont [2/4] (short) (narrow) %v581_v41, 8  ;;  %v615_v46 = vcombine.low %v607_v44, %v614_v45 }
  0xee   : > { %622 = vxpose.xlu0.b32.cont [3/4] (short) (narrow) %v598_v39, 8 }
  0xf2   : > { %623 = vxpose.xlu0.b32.end [4/4] (short) (narrow) %v615_v46, 8 }
 0x146   : > { %v1138_v40 = vpop.trf.xlu1 }
 0x147   : > { %1155 = vrot.lane.b32.xlu1 %v1138_v40, %s1496_s21 }
 0x162   : > { %v636_v48 = vpop.trf.xlu0 }
 0x163   : > { %653 = vst.msk [vmem:[%s151_s15] sm:$0xff] %vm652_vm1, %v636_v48 }
 0x1b9   : > { %v1156_v28 = vpop.permute.xlu1 %1155 }
 0x1ba   : > { %1159 = vst.msk [vmem:[%s151_s15] sm:$0xff] %vm1158_vm2, %v1156_v28 }
 0x1bb   : > { %1405 = shalt.err (!%p1402_p7)
}
 0x1bc   : > { %s1406_s5 = scalar_lea.hbm %s1809_s20, 128  ;;  %s1410_s21 = scalar_lea.hbm %s1857_s1, 512 }
 0x1bd   : > { %p1407_p10 = scmp.ne.s32.totalorder %s1809_s20, %s1406_s5  ;;  %p1411_p13 = scmp.lt.s32.totalorder %s1809_s20, %s1857_s1 }
 0x1be   : > { %p1412_p1 = scmp.lt.s32.totalorder %s1410_s21, %s1406_s5 }
 0x1bf   : > { %p1408_p11 = pnand %p1407_p10, %p1573_p9 }
 0x1c0   : > { %p1413_p8 = por %p1412_p1, %p1411_p13 }
 0x1c1   : > { %p1409_p3 = pneg %p1408_p11 }
 0x1c3   : > { %p1414_p0 = pnand %p1413_p8, %p1409_p3 }
 0x1c5   : > { %1417 = shalt.err (!%p1414_p0)
}
 0x1c6   : > { %1281 = dma.vmem_to_hbm [thread:$0]  (%p1573_p9), %s1177_s24, 128, %s1809_s20, %s1161_s26  }
 0x1c7 PF: > { %p1292_p2 = scmp.ge.s32.totalorder %s1488_s13, 2  ;;  %s1188_s19 = sand.u32 1, %s1460_s6  }
 0x1c8   : > { %s1189_s23 = scalar_lea.sflag [#allocation4], %s1188_s19 }
 0x1c9   : > { %p1288_p4 = pnand %p1292_p2, %p1579_p12 }
 0x1cb   : > { %p1289_p5 = pneg %p1288_p4 }
 0x1cd   : > { %1455 = dma.done.wait (%p1289_p5), %s1189_s23, 128  }
 0x1ce   : > { %1457 = vsyncadd (%p1289_p5), %s1189_s23, 4294967168  ;;  %s17_s13 = sadd.s32 1, %s1488_s13   ;;  %s1863_s6 = smov %s1464_s7 }
 0x1cf   : > { %p14_p6 = scmp.ge.s32.totalorder %s17_s13, 6   ;;  %s1864_s7 = smov %s1468_s8 }
 0x1d0   : > { %s1865_s8 = smov %s1586_s27  ;;  %s1866_s9 = smov %s1480_s11 }
 0x1d1   : > { %s1867_s10 = smov %s1484_s12  ;;  %s1868_s11 = smov %s1871_s16 }
 0x1d2   : > { %s1869_s12 = smov %s1875_s17  ;;  %16 = sbr.rel (!%p14_p6) target bundleno = 7 (0x7), region = 72 }
 0x1d7   :  { %1194 = vsyncpa [#allocation3], 1 }
 0x1d8   :  { %1196 = vsyncpa [#allocation3 + $0x1], 1 }
 0x1d9   :  { %1197 = vsyncpa [#allocation4], 1 }
 0x1da   :  { %1199 = vsyncpa [#allocation4 + $0x1], 1 }

</bundles_post_ra>
